<compile_context>
chip_gen: v6e
topology: v6e:2x2x1
jax: 0.10.0
libtpu: 0.0.40
codegen_flags: <defaults>
</compile_context>

<pallas_src>
import math

import jax
import jax.numpy as jnp
import numpy as np
from jax.experimental import pallas as pl
from jax.experimental.pallas import tpu as pltpu


# ----------------------------------------------------------------------------
# Static (trace-time) glue: patch grid, gaussian mask, per-pixel scale maps
# ----------------------------------------------------------------------------
def compute_locations(H, W, patch_size, min_overlap):
    n_h = math.ceil((H - min_overlap) / (patch_size - min_overlap))
    n_w = math.ceil((W - min_overlap) / (patch_size - min_overlap))
    stride_h = float(np.float32((H - patch_size) / max(n_h - 1, 1)))
    stride_w = float(np.float32((W - patch_size) / max(n_w - 1, 1)))
    locs = []
    for i in range(n_h):
        for j in range(n_w):
            hs = min(int(round(i * stride_h)), H - patch_size)
            ws = min(int(round(j * stride_w)), W - patch_size)
            locs.append((hs, ws))
    return tuple(locs)


def gaussian_weight_mask_np(patch_size):
    x = np.linspace(-1.0, 1.0, patch_size, dtype=np.float32)
    xx, yy = np.meshgrid(x, x, indexing="ij")
    return np.exp(-(xx ** 2 + yy ** 2) / 1.5).astype(np.float32)


def precompute_scale_maps(H, W, patch_size, min_overlap, eps=1e-8):
    """Compile-time per-pixel maps for the collapsed (linear base_model) form."""
    mask = gaussian_weight_mask_np(patch_size)
    locs = compute_locations(H, W, patch_size, min_overlap)
    count = np.zeros((H, W), np.float32)
    msum = np.zeros((H, W), np.float32)
    P = patch_size
    for hs, ws in locs:
        count[hs:hs + P, ws:ws + P] += 1.0
        msum[hs:hs + P, ws:ws + P] += mask
    conv_scale = (msum / (count + eps)).astype(np.float32)   # multiplies W @ x
    bias_scale = (count / (count + eps)).astype(np.float32)  # multiplies bias b
    return conv_scale, bias_scale


def _pick_spatial_tile(hw, c, budget_bytes=4 * 1024 * 1024):
    """Largest multiple-of-128 divisor of hw with c*T*4 bytes <= budget."""
    if hw % 128 != 0:
        return hw  # fall back to a full-extent block
    max_lanes = max(128, (budget_bytes // (max(c, 1) * 4)) // 128 * 128)
    best, t = 128, 128
    while t <= hw and t <= max_lanes:
        if hw % t == 0:
            best = t
        t += 128
    return best


# ----------------------------------------------------------------------------
# Pallas kernel: per (batch, spatial-tile) -> (C_out, T) = W @ x, scaled affine
# ----------------------------------------------------------------------------
def _patch_conv_kernel(x_ref, w_ref, b_ref, cs_ref, bs_ref, o_ref):
    # x_ref : (1, C, T)   spatial tile, lane-dense on T
    # w_ref : (C_out, C_in)
    # b_ref : (C_out, 1)
    # cs_ref: (1, T)      conv scale   = sum_k mask_k / (count + eps)
    # bs_ref: (1, T)      bias scale   = count / (count + eps)
    conv = jnp.dot(w_ref[...], x_ref[0],
                   preferred_element_type=jnp.float32)      # (C_out, T), N lane-dense
    o_ref[0] = conv * cs_ref[...] + b_ref[...] * bs_ref[...]


def exact_size_patch_network(x_nchw, conv_w, conv_b, patch_size=16, min_overlap=8):
    """JAX/Pallas equivalent of ExactSizePatchNetworkONNX.forward (NCHW in/out)."""
    x = x_nchw.astype(jnp.float32)
    B, C, H, W = x.shape
    original_shape = x.shape
    HW = H * W

    conv_scale_np, bias_scale_np = precompute_scale_maps(H, W, patch_size, min_overlap)
    conv_scale = jnp.asarray(conv_scale_np.reshape(1, HW))
    bias_scale = jnp.asarray(bias_scale_np.reshape(1, HW))

    # conv_w is stored (C_in, C_out) (== PyTorch weight[:, :, 0, 0].T); kernel
    # wants (C_out, C_in) so the matmul output lanes are the spatial dim.
    w_oc = jnp.asarray(conv_w, jnp.float32).T          # (C_out, C_in)
    b_col = jnp.asarray(conv_b, jnp.float32).reshape(C, 1)

    x_flat = x.reshape(B, C, HW)                       # no layout transpose

    T = _pick_spatial_tile(HW, C)
    n_t = HW // T

    out_flat = pl.pallas_call(
        _patch_conv_kernel,
        out_shape=jax.ShapeDtypeStruct((B, C, HW), jnp.float32),
        grid_spec=pltpu.PrefetchScalarGridSpec(
            num_scalar_prefetch=0,
            grid=(B, n_t),
            in_specs=[
                pl.BlockSpec((1, C, T), lambda b, t: (b, 0, t)),   # x tile
                pl.BlockSpec((C, C), lambda b, t: (0, 0)),         # conv weight
                pl.BlockSpec((C, 1), lambda b, t: (0, 0)),         # conv bias
                pl.BlockSpec((1, T), lambda b, t: (0, t)),         # conv scale map
                pl.BlockSpec((1, T), lambda b, t: (0, t)),         # bias scale map
            ],
            out_specs=pl.BlockSpec((1, C, T), lambda b, t: (b, 0, t)),
        ),
        compiler_params=pltpu.CompilerParams(
            dimension_semantics=("parallel", "parallel"),
            vmem_limit_bytes=32 * 1024 * 1024,
        ),
    )(x_flat, w_oc, b_col, conv_scale, bias_scale)

    out = out_flat.reshape(B, C, H, W)
    assert out.shape == original_shape
    return out


# ----------------------------------------------------------------------------
# Pure-JAX reference (mirrors the PyTorch forward per-patch, NCHW)
# ----------------------------------------------------------------------------
def reference(x_nchw, conv_w, conv_b, patch_size=16, min_overlap=8):
    x = x_nchw.astype(jnp.float32)
    B, C, H, W = x.shape
    locations = compute_locations(H, W, patch_size, min_overlap)
    mask = jnp.asarray(gaussian_weight_mask_np(patch_size))
    out = jnp.zeros((B, C, H, W), jnp.float32)
    wt = jnp.zeros((B, 1, H, W), jnp.float32)
    P = patch_size
    for (hs, ws) in locations:
        patch = x[:, :, hs:hs + P, ws:ws + P] * mask[None, None]
        conv = jnp.einsum("bchw,cd->bdhw", patch, conv_w) + conv_b[None, :, None, None]
        out = out.at[:, :, hs:hs + P, ws:ws + P].add(conv)
        wt = wt.at[:, :, hs:hs + P, ws:ws + P].add(1.0)
    return out / (wt + 1e-8)


if __name__ == "__main__":
    key = jax.random.PRNGKey(0)
    kx, kw, kb = jax.random.split(key, 3)

    # small shapes consistent with the module: patch_size=16, min_overlap=8
    B, C, H, W = 2, 4, 32, 32
    PATCH, OVERLAP = 16, 8

    x = jax.random.normal(kx, (B, C, H, W), dtype=jnp.float32)
    # deterministic synthetic base_model params: 1x1 conv, stored as (C_in, C_out)
    conv_w = 0.3 * jax.random.normal(kw, (C, C), dtype=jnp.float32)
    conv_b = 0.1 * jax.random.normal(kb, (C,), dtype=jnp.float32)

    out = exact_size_patch_network(x, conv_w, conv_b, PATCH, OVERLAP)
    out = jax.block_until_ready(out)
    assert out.shape == x.shape

    ref = reference(x, conv_w, conv_b, PATCH, OVERLAP)
    np.testing.assert_allclose(np.asarray(out), np.asarray(ref),
                               rtol=5e-2, atol=5e-2)
    print("KERNEL_OK")
</pallas_src>

<mosaic_0001>
module attributes {stable_mosaic.version = 11 : i64} {
  func.func @_patch_conv_kernel(%arg0: i32, %arg1: i32, %arg2: memref<1x4x1024xf32, #tpu.memory_space<vmem>>, %arg3: memref<4x4xf32, #tpu.memory_space<vmem>>, %arg4: memref<4x1xf32, #tpu.memory_space<vmem>>, %arg5: memref<1x1024xf32, #tpu.memory_space<vmem>>, %arg6: memref<1x1024xf32, #tpu.memory_space<vmem>>, %arg7: memref<1x4x1024xf32, #tpu.memory_space<vmem>>) attributes {dimension_semantics = [#tpu.dimension_semantics<parallel>, #tpu.dimension_semantics<parallel>], iteration_bounds = array<i64: 2, 1>, scalar_prefetch = 0 : i64, scratch_operands = 0 : i64, tpu.core_type = #tpu.core_type<tc>, window_params = [{transform_indices = @transform_0, window_bounds = array<i64: 1, 4, 1024>}, {pipeline_mode = #tpu.pipeline_mode<synchronous>, transform_indices = @transform_1, window_bounds = array<i64: 4, 4>}, {pipeline_mode = #tpu.pipeline_mode<synchronous>, transform_indices = @transform_2, window_bounds = array<i64: 4, 1>}, {transform_indices = @transform_3, window_bounds = array<i64: 1, 1024>}, {transform_indices = @transform_4, window_bounds = array<i64: 1, 1024>}, {transform_indices = @transform_5, window_bounds = array<i64: 1, 4, 1024>}]} {
    %c0 = arith.constant 0 : index
    %c0_0 = arith.constant 0 : index
    %0 = vector.load %arg3[%c0, %c0_0] : memref<4x4xf32, #tpu.memory_space<vmem>>, vector<4x4xf32>
    %c0_1 = arith.constant 0 : index
    %c0_2 = arith.constant 0 : index
    %c0_3 = arith.constant 0 : index
    %1 = vector.load %arg2[%c0_1, %c0_2, %c0_3] : memref<1x4x1024xf32, #tpu.memory_space<vmem>>, vector<1x4x1024xf32>
    %2 = vector.shape_cast %1 : vector<1x4x1024xf32> to vector<4x1024xf32>
    %cst = arith.constant dense<0.000000e+00> : vector<4x1024xf32>
    %3 = tpu.matmul %0, %2, %cst {dimension_numbers = #tpu.dot_dimension_numbers<[1], [0], [0], [1], [0, 0, 1, 1], [], []>} : vector<4x4xf32>, vector<4x1024xf32>, vector<4x1024xf32> -> vector<4x1024xf32>
    %c0_4 = arith.constant 0 : index
    %c0_5 = arith.constant 0 : index
    %4 = vector.load %arg5[%c0_4, %c0_5] : memref<1x1024xf32, #tpu.memory_space<vmem>>, vector<1x1024xf32>
    %5 = vector.broadcast %4 : vector<1x1024xf32> to vector<4x1024xf32>
    %6 = arith.mulf %3, %5 : vector<4x1024xf32>
    %c0_6 = arith.constant 0 : index
    %c0_7 = arith.constant 0 : index
    %7 = vector.load %arg4[%c0_6, %c0_7] : memref<4x1xf32, #tpu.memory_space<vmem>>, vector<4x1xf32>
    %c0_8 = arith.constant 0 : index
    %c0_9 = arith.constant 0 : index
    %8 = vector.load %arg6[%c0_8, %c0_9] : memref<1x1024xf32, #tpu.memory_space<vmem>>, vector<1x1024xf32>
    %9 = vector.broadcast %7 : vector<4x1xf32> to vector<4x1024xf32>
    %10 = vector.broadcast %8 : vector<1x1024xf32> to vector<4x1024xf32>
    %11 = arith.mulf %9, %10 : vector<4x1024xf32>
    %12 = arith.addf %6, %11 : vector<4x1024xf32>
    %c0_10 = arith.constant 0 : index
    %c0_11 = arith.constant 0 : index
    %c0_12 = arith.constant 0 : index
    %13 = vector.load %arg7[%c0_10, %c0_11, %c0_12] : memref<1x4x1024xf32, #tpu.memory_space<vmem>>, vector<1x4x1024xf32>
    %14 = vector.shape_cast %13 : vector<1x4x1024xf32> to vector<4x1024xf32>
    %15 = vector.shape_cast %12 : vector<4x1024xf32> to vector<1x4x1024xf32>
    tpu.vector_store %arg7[%c0_10, %c0_11, %c0_12], %15 {strides = array<i32>} : memref<1x4x1024xf32, #tpu.memory_space<vmem>>, vector<1x4x1024xf32>,
    return
  }
  func.func @transform_0(%arg0: i32, %arg1: i32) -> (i32, i32, i32) {
    %c0_i32 = arith.constant 0 : i32
    %c0_i32_0 = arith.constant 0 : i32
    return %arg0, %c0_i32, %arg1 : i32, i32, i32
  }
  func.func @transform_1(%arg0: i32, %arg1: i32) -> (i32, i32) {
    %c0_i32 = arith.constant 0 : i32
    %c0_i32_0 = arith.constant 0 : i32
    %c0_i32_1 = arith.constant 0 : i32
    return %c0_i32, %c0_i32_0 : i32, i32
  }
  func.func @transform_2(%arg0: i32, %arg1: i32) -> (i32, i32) {
    %c0_i32 = arith.constant 0 : i32
    %c0_i32_0 = arith.constant 0 : i32
    %c0_i32_1 = arith.constant 0 : i32
    return %c0_i32, %c0_i32_0 : i32, i32
  }
  func.func @transform_3(%arg0: i32, %arg1: i32) -> (i32, i32) {
    %c0_i32 = arith.constant 0 : i32
    %c0_i32_0 = arith.constant 0 : i32
    return %c0_i32, %arg1 : i32, i32
  }
  func.func @transform_4(%arg0: i32, %arg1: i32) -> (i32, i32) {
    %c0_i32 = arith.constant 0 : i32
    %c0_i32_0 = arith.constant 0 : i32
    return %c0_i32, %arg1 : i32, i32
  }
  func.func @transform_5(%arg0: i32, %arg1: i32) -> (i32, i32, i32) {
    %c0_i32 = arith.constant 0 : i32
    %c0_i32_0 = arith.constant 0 : i32
    return %arg0, %c0_i32, %arg1 : i32, i32, i32
  }
}

</mosaic_0001>

<bundles_post_ra>
// kernel: tpu_custom_call.1
= control target key start
LH: loop header
LB: loop body
LE: loop exit
PB: predicated region body
PF: predicated region fallthrough
CT: control target
= control target key end

     0   :  { %s1428_s0 = inlined_call_operand.hbm [shape: f32[2,4,1024], index: 0, kind: input, shape index: {}]   ;;  %s1429_s1 = inlined_call_operand.hbm [shape: f32[4,4], index: 1, kind: input, shape index: {}]   ;;  %s1430_s2 = inlined_call_operand.vmem [shape: f32[4,1], index: 2, kind: input, shape index: {}]   ;;  %s1431_s3 = inlined_call_operand.vmem [shape: f32[1,1024], index: 3, kind: input, shape index: {}]   ;;  %s1432_s4 = inlined_call_operand.hbm [shape: f32[1,1024], index: 4, kind: input, shape index: {}]   ;;  %s1433_s5 = inlined_call_operand.hbm [shape: f32[2,4,1024], index: 5, kind: output, shape index: {}]  }
   0x1   :  { %1438 = sst [smem:[#allocation12_spill]] %s1429_s1 }
   0x2   :  { %10 = vsyncpa [#allocation3], 0 }
   0x3   :  { %12 = vsyncpa [#allocation3 + $0x1], 0 }
   0x4   :  { %13 = vsyncpa [#allocation6], 0 }
   0x5   :  { %14 = vsyncpa [#allocation4], 0 }
   0x6   :  { %16 = vsyncpa [#allocation4 + $0x1], 0  ;;  %s1226_s18 = smov 0   ;;  %s1228_s19 = smov 0  }
   0x7   :  { %s1230_s20 = smov 0   ;;  %s1232_s21 = smov 0  }
   0x8   :  { %s1234_s22 = smov 0   ;;  %s1236_s23 = smov 0  }
   0x9 LB: > { %s900_s24 = sadd.s32 4294967295, %s1188_s23   ;;  %s901_s25 = sadd.s32 4294967294, %s1188_s23   ;;  %s1188_s23 = sphi %s1236_s23, %s22_s23   ;;  %s1184_s22 = sphi %s1234_s22, %s1458_s22   ;;  %s1180_s21 = sphi %s1232_s21, %s1457_s21   ;;  %s1176_s20 = sphi %s1230_s20, %s1456_s20   ;;  %s1172_s19 = sphi %s1228_s19, %s1455_s19   ;;  %s1168_s18 = sphi %s1226_s18, %s1454_s18  }
   0xa   : > { %p56_p0 = scmp.ne.s32.totalorder %s1172_s19, %s1168_s18  ;;  %p1260_p1 = scmp.eq.s32.totalorder %s900_s24, 0 }
   0xb   : > { %p1264_p2 = scmp.eq.s32.totalorder %s900_s24, 1  ;;  %p182_p3 = scmp.eq.s32.totalorder %s901_s25, 1 }
   0xc   : > { %s1439_s26 = scalar_select %p1260_p1, 1, 0 }
   0xd   : > { %s1440_s27 = scalar_select %p1264_p2, 1, 0 }
   0xe   : > { %p1270_p4 = por %p1260_p1, %p56_p0  ;;  %p902_p5 = scmp.ge.s32.totalorder %s1188_s23, 1 }
   0xf   : > { %p1275_p6 = por %p182_p3, %p56_p0  ;;  %p189_p7 = scmp.lt.s32.totalorder %s1188_s23, 3 }
  0x10   : > { %s1441_s28 = scalar_select %p1270_p4, 1, 0 }
  0x11   : > { %s1442_s29 = scalar_select %p1275_p6, 1, 0 }
  0x12   : > { %p1280_p8 = pnand %p902_p5, %p189_p7  ;;  %s1190_s6 = smov [#allocation5]  }
  0x13   : > { %s202_s7 = sshll.u32 %s1190_s6, 4  ;;  %s1191_s8 = smov [#allocation7]   ;;  %s203_s7 = int_to_ptr.vmem [resolvable:$true] %s202_s7 }
  0x14   : > { %s1443_s30 = scalar_select %p1280_p8, 1, 0 }
  0x15   : > { %p946_p10 = pneg %p1280_p8  ;;  %s227_s9 = sshll.u32 %s1191_s8, 4  ;;  %s228_s9 = int_to_ptr.vmem [resolvable:$true] %s227_s9 }
  0x16   : > { %s1035_s11 = scalar_lea.vmem %s203_s7, 64  ;;  %p1043_p5 = scmp.lt.s32.totalorder %s203_s7, %s203_s7 }
  0x17   : > { %p1289_p11 = pnand %p946_p10, %p1260_p1  ;;  %p1036_p13 = scmp.ne.s32.totalorder %s203_s7, %s1035_s11 }
  0x18   : > { %p1044_p7 = scmp.lt.s32.totalorder %s1035_s11, %s1035_s11 }
  0x19   : > { %p1026_p12 = pneg %p1289_p11 }
  0x1a   : > { %p1045_p9 = por %p1044_p7, %p1043_p5 }
  0x1b   : > { %p1038_p0 = pnand %p1036_p13, %p1026_p12 }
  0x1d   : > { %p1039_p3 = pneg %p1038_p0 }
  0x1f   : > { %p1046_p6 = pnand %p1045_p9, %p1039_p3 }
  0x21   : > { %1049 = shalt.err (!%p1046_p6)
}
  0x22   : > { %s1445_s1 = sld [smem:[#allocation12_spill]]  ;;  %s1061_s14 = scalar_lea.vmem %s228_s9, 128 }
  0x23   : > { %p1062_p10 = scmp.ne.s32.totalorder %s228_s9, %s1061_s14  ;;  %p1069_p13 = scmp.lt.s32.totalorder %s228_s9, %s228_s9 }
  0x24   : > { %p1070_p0 = scmp.lt.s32.totalorder %s1061_s14, %s1061_s14 }
  0x25   : > { %p1064_p1 = pnand %p1062_p10, %p1026_p12 }
  0x26   : > { %p1071_p8 = por %p1070_p0, %p1069_p13 }
  0x27   : > { %p1065_p4 = pneg %p1064_p1 }
  0x28   : > { %949 = dma.hbm_to_vmem [thread:$0]  (!%p1289_p11), %s1445_s1, 64, %s203_s7, [#allocation6]  }
  0x29   : > { %p1072_p2 = pnand %p1071_p8, %p1065_p4 }
  0x2b   : > { %1075 = shalt.err (!%p1072_p2)
}
  0x2c   : > { %952 = dma.hbm_to_vmem [thread:$0]  (!%p1289_p11), %s1432_s4, 128, %s228_s9, [#allocation6]  }
  0x2d   : > { %s34_s17 = sadd.s32 1, %s1184_s22  ;;  %s43_s24 = sadd.s32 1, %s1176_s20 }
  0x2e   : > { %p36_p1 = scmp.ge.s32.totalorder %s34_s17, 2  ;;  %p50_p2 = scmp.ne.s32.totalorder %s1176_s20, %s1172_s19 }
  0x2f   : > { %p51_p4 = scmp.eq.s32.totalorder %s1188_s23, 0  ;;  %p963_p6 = scmp.lt.s32.totalorder %s1188_s23, 2 }
  0x30   : > { %s1460_s17 = smov (%p36_p1, %s34_s17), 0  ;;  %p1446_p9 = scmp.ne.s32.totalorder %s1440_s27, 0 }
  0x31   : > { %p52_p8 = por %p51_p4, %p50_p2  ;;  %s38_s6 = ssub.s32 %s1184_s22, %s1460_s17 }
  0x32   : > { %p1321_p12 = por %p1446_p9, %p50_p2  ;;  %s238_s7 = sand.u32 1, %s1176_s20  }
  0x33   : > { %p41_p3 = scmp.eq.s32.totalorder %s38_s6, 0  ;;  %s907_s8 = sshll.u32 %s238_s7, 5 }
  0x34   : > { %s932_s9 = sshll.u32 %s1184_s22, 9  ;;  %s242_s14 = scalar_lea.vmem [#allocation2], %s907_s8 }
  0x35   : > { %s1330_s10 = scalar_select %p41_p3, %s1176_s20, %s43_s24  }
  0x36   : > { %s250_s13 = scalar_lea.hbm %s1428_s0, %s932_s9  ;;  %s252_s15 = sshll.u32 %s242_s14, 4  ;;  %s253_s15 = int_to_ptr.vmem [resolvable:$true] %s252_s15 }
  0x37   : > { %p1337_p11 = pnand %p963_p6, %p52_p8  ;;  %s239_s16 = scalar_lea.sflag [#allocation3], %s238_s7 }
  0x38   : > { %s1089_s6 = scalar_lea.vmem %s253_s15, 512  ;;  %s1192_s24 = smov [#allocation2]  }
  0x39   : > { %p1078_p5 = pneg %p1337_p11  ;;  %p1090_p7 = scmp.ne.s32.totalorder %s253_s15, %s1089_s6 }
  0x3a   : > { %s1094_s1 = sshll.u32 %s1192_s24, 4  ;;  %s1095_s1 = int_to_ptr.vmem [resolvable:$false] %s1094_s1 }
  0x3b   : > { %p1092_p10 = pnand %p1090_p7, %p1078_p5  ;;  %s1096_s9 = scalar_lea.vmem %s1095_s1, 1024 }
  0x3c   : > { %p1097_p0 = scmp.lt.s32.totalorder %s253_s15, %s1095_s1  ;;  %p1098_p1 = scmp.lt.s32.totalorder %s1096_s9, %s1089_s6 }
  0x3d   : > { %p1093_p13 = pneg %p1092_p10 }
  0x3e   : > { %p1099_p2 = por %p1098_p1, %p1097_p0 }
  0x40   : > { %p1100_p4 = pnand %p1099_p2, %p1093_p13 }
  0x42   : > { %1103 = shalt.err (!%p1100_p4)
}
  0x43   : > { %956 = dma.hbm_to_vmem [thread:$0]  (!%p1337_p11), %s250_s13, 512, %s253_s15, %s239_s16  }
  0x44   : > { %p1449_p6 = scmp.ne.s32.totalorder %s1443_s30, 0 }
  0x45   : > { %s1348_s7 = sand.u32 (!%p1449_p6), 1, %s1172_s19   ;;  %p1450_p8 = scmp.ne.s32.totalorder (!%p1449_p6), %s1441_s28, 0 }
  0x46   : > { %261 = sbr.rel (%p1449_p6) target bundleno = 303 (0x12f), region = 40  ;;  %s911_s8 = sshll.u32 (!%p1449_p6), %s1348_s7, 5 }
  0x47   : > { %s264_s11 = scalar_lea.sflag (!%p1449_p6), [#allocation3], %s1348_s7  ;;  %s267_s1 = scalar_lea.vmem (!%p1449_p6), [#allocation2], %s911_s8 }
  0x4b   : > { %1155 = dma.done.wait (%p1450_p8), %s264_s11, 512  }
  0x4c   : > { %1157 = vsyncadd (%p1450_p8), %s264_s11, 4294966784  ;;  %p1451_p9 = scmp.ne.s32.totalorder %s1439_s26, 0 }
  0x4e   : > { %1159 = dma.done.wait (%p1451_p9), [#allocation6], 192  }
  0x4f   : > { %1161 = vsyncadd (%p1451_p9), [#allocation6], 4294967104  ;;  %v1193_v0 = vmov 0.0   ;;  %v1194_v1 = vmov 0   ;;  %v315_v2 = vld [vmem:[%s267_s1] sm:$0xff]  ;;  %vm331_vm0 = vcmask 1043456   ;;  %v634_v12 = vlaneseq }
  0x50   : > { %412 = vmatprep.mubr.f32.mxu0 %v1193_v0  ;;  %483 = vmatprep.mubr.f32.mxu1 %v1193_v0  ;;  %v316_v3 = vld [vmem:[%s267_s1 + $0x8] sm:$0xff]  ;;  %v323_v4 = vcombine.high %v315_v2, %v315_v2  ;;  %v317_v6 = vld [vmem:[%s267_s1 + $0x10] sm:$0xff]  ;;  %v318_v7 = vld [vmem:[%s267_s1 + $0x18] sm:$0xff]  ;;  %vm327_vm1 = vcmask 31744   ;;  %s305_s13 = scalar_lea.vmem [#allocation8], %s911_s8  ;;  %s933_s14 = sshll.u32 %s1180_s21, 9 }
  0x51   : > { %1019 = vset.pattern.permute.xlu0 %v1194_v1  ;;  %v324_v5 = vcombine.high %v316_v3, %v316_v3  ;;  %v682_v8 = vld [vmem:[%s1430_s2] sm:$0xf]  ;;  %v325_v10 = vcombine.high %v317_v6, %v317_v6  ;;  %v326_v11 = vcombine.high %v318_v7, %v318_v7  ;;  %v635_v13 = vshrl.u32 %v634_v12, 7  ;;  %v683_v16 = vld [vmem:[#allocation7] sm:$0xff]  ;;  %s783_s15 = sshll.u32 %s305_s13, 4  ;;  %s1386_s6 = scalar_lea.hbm %s1433_s5, %s933_s14  ;;  %s784_s15 = int_to_ptr.vmem [resolvable:$true] %s783_s15 }
  0x52   : > { %v314_v9 = vld [vmem:[#allocation5] sm:$0xf]  ;;  %686 = vperm.xlu0 %1019, %v682_v8   ;;  %915 = vmatprep.subr.msk.mxu0 %vm331_vm0, %v323_v4  ;;  %s767_s24 = scalar_lea.sflag [#allocation4], %s1348_s7  ;;  %s1104_s9 = scalar_lea.vmem %s784_s15, 512 }
  0x53   : > { %918 = vmatprep.subr.msk.mxu1 %vm331_vm0, %v324_v5  ;;  %916 = vmatpush1.msk.msra.mxu0 %vm331_vm0, %v315_v2  ;;  %v636_v14 = vsub.s32 0, %v635_v13  ;;  %v640_v15 = vsub.s32 1, %v635_v13  ;;  %v644_v17 = vsub.s32 2, %v635_v13  ;;  %v648_v18 = vsub.s32 3, %v635_v13  ;;  %v632_v19 = vld [vmem:[%s1431_s3] sm:$0xff]  ;;  %p1105_p3 = scmp.ne.s32.totalorder %s784_s15, %s1104_s9  ;;  %s1195_s21 = smov [#allocation8]  }
  0x54   : > { %919 = vmatpush1.msk.msra.mxu1 %vm331_vm0, %v316_v3  ;;  %917 = vmatmul.mubr.msk.f32.vlgmr.msra.gmra.mxu0 %vm327_vm1, %v314_v9  ;;  %v652_v22 = vsub.s32 4, %v635_v13  ;;  %v660_v23 = vsub.s32 6, %v635_v13  ;;  %v656_v29 = vsub.s32 5, %v635_v13  ;;  %v664_v30 = vsub.s32 7, %v635_v13  ;;  %s1108_s8 = sshll.u32 %s1195_s21, 4  ;;  %s1109_s8 = int_to_ptr.vmem [resolvable:$false] %s1108_s8 }
  0x55   : > { %920 = vmatmul.mubr.msk.f32.vlgmr.msra.gmra.mxu1 %vm327_vm1, %v314_v9  ;;  %921 = vmatprep.subr.msk.mxu0 %vm331_vm0, %v325_v10  ;;  %v693_v20 = vrot.slane %v683_v16, %v636_v14  ;;  %v697_v21 = vrot.slane %v683_v16, %v640_v15  ;;  %v637_v24 = vrot.slane %v632_v19, %v636_v14  ;;  %p1106_p11 = pnand %p1105_p3, %p1321_p12  ;;  %s1110_s11 = scalar_lea.vmem %s1109_s8, 1024 }
  0x56   : > { %924 = vmatprep.subr.msk.mxu1 %vm331_vm0, %v326_v11  ;;  %922 = vmatpush1.msk.msra.mxu0 %vm331_vm0, %v317_v6  ;;  %v645_v25 = vrot.slane %v632_v19, %v644_v17  ;;  %v701_v26 = vrot.slane %v683_v16, %v644_v17  ;;  %v705_v28 = vrot.slane %v683_v16, %v648_v18  ;;  %p1111_p7 = scmp.lt.s32.totalorder %s784_s15, %s1109_s8  ;;  %p1112_p10 = scmp.lt.s32.totalorder %s1110_s11, %s1104_s9 }
  0x57   : > { %925 = vmatpush1.msk.msra.mxu1 %vm331_vm0, %v318_v7  ;;  %554 = vmatprep.mubr.f32.mxu0 %v1193_v0  ;;  %v641_v31 = vrot.slane %v632_v19, %v640_v15  ;;  %v649_v32 = vrot.slane %v632_v19, %v648_v18  ;;  %v709_v37 = vrot.slane %v683_v16, %v652_v22  ;;  %p1107_p5 = pneg %p1106_p11 }
  0x58   : > { %625 = vmatprep.mubr.f32.mxu1 %v1193_v0  ;;  %923 = vmatmul.mubr.msk.f32.vlgmr.msra.gmra.mxu0 %vm327_vm1, %v314_v9  ;;  %v717_v38 = vrot.slane %v683_v16, %v660_v23  ;;  %v653_v45 = vrot.slane %v632_v19, %v652_v22  ;;  %v661_v46 = vrot.slane %v632_v19, %v660_v23  ;;  %p1113_p13 = por %p1112_p10, %p1111_p7 }
  0x59   : > { %926 = vmatmul.mubr.msk.f32.vlgmr.msra.gmra.mxu1 %vm327_vm1, %v314_v9  ;;  %v713_v47 = vrot.slane %v683_v16, %v656_v29  ;;  %v721_v48 = vrot.slane %v683_v16, %v664_v30  ;;  %v657_v55 = vrot.slane %v632_v19, %v656_v29  ;;  %v665_v56 = vrot.slane %v632_v19, %v664_v30 }
  0x5a   : > { %p1114_p0 = pnand %p1113_p13, %p1107_p5 }
  0xcd   : > { %v687_v27 = vpop.permute.xlu0 %686 }
  0xce   : > { %v730_v35 = vmul.f32 %v693_v20, %v687_v27  ;;  %v731_v36 = vmul.f32 %v697_v21, %v687_v27  ;;  %v732_v41 = vmul.f32 %v701_v26, %v687_v27  ;;  %v733_v42 = vmul.f32 %v705_v28, %v687_v27 }
  0xcf   : > { %v734_v52 = vmul.f32 %v709_v37, %v687_v27  ;;  %v736_v54 = vmul.f32 %v717_v38, %v687_v27  ;;  %v735_v0 = vmul.f32 %v713_v47, %v687_v27  ;;  %v737_v2 = vmul.f32 %v721_v48, %v687_v27 }
 0x114   : > { %v414_v33 = vpop.f32.mrf.mxu0 }
 0x115   : > { %v485_v34 = vpop.f32.mrf.mxu1  ;;  %v674_v39 = vmul.f32 %v637_v24, %v414_v33 }
 0x116   : > { %v676_v40 = vmul.f32 %v645_v25, %v485_v34  ;;  %v416_v43 = vpop.f32.mrf.mxu0 }
 0x117   : > { %v487_v44 = vpop.f32.mrf.mxu1  ;;  %v675_v49 = vmul.f32 %v641_v31, %v416_v43  ;;  %v738_v57 = vadd.f32 %v730_v35, %v674_v39 }
 0x118   : > { %v677_v50 = vmul.f32 %v649_v32, %v487_v44  ;;  %v556_v51 = vpop.f32.mrf.mxu0  ;;  %v740_v59 = vadd.f32 %v732_v41, %v676_v40 }
 0x119   : > { %v627_v53 = vpop.f32.mrf.mxu1  ;;  %v739_v58 = vadd.f32 %v731_v36, %v675_v49  ;;  %v678_v61 = vmul.f32 %v653_v45, %v556_v51 }
 0x11a   : > { %v741_v60 = vadd.f32 %v733_v42, %v677_v50  ;;  %v680_v62 = vmul.f32 %v661_v46, %v627_v53  ;;  %v558_v63 = vpop.f32.mrf.mxu0 }
 0x11b   : > { %v629_v1 = vpop.f32.mrf.mxu1  ;;  %v754_v3 = vcombine.low %v738_v57, %v739_v58  ;;  %v679_v5 = vmul.f32 %v657_v55, %v558_v63  ;;  %v742_v7 = vadd.f32 %v734_v52, %v678_v61 }
 0x11c   : > { %v755_v4 = vcombine.low %v740_v59, %v741_v60  ;;  %v681_v6 = vmul.f32 %v665_v56, %v629_v1  ;;  %v744_v8 = vadd.f32 %v736_v54, %v680_v62 }
 0x11d   : > { %762 = vst [vmem:[%s305_s13] sm:$0xff] %v754_v3  ;;  %v743_v9 = vadd.f32 %v735_v0, %v679_v5 }
 0x11e   : > { %763 = vst [vmem:[%s305_s13 + $0x8] sm:$0xff] %v755_v4  ;;  %v745_v10 = vadd.f32 %v737_v2, %v681_v6 }
 0x11f   : > { %v756_v11 = vcombine.low %v742_v7, %v743_v9 }
 0x120   : > { %v757_v12 = vcombine.low %v744_v8, %v745_v10 }
 0x121   : > { %764 = vst [vmem:[%s305_s13 + $0x10] sm:$0xff] %v756_v11 }
 0x122   : > { %765 = vst [vmem:[%s305_s13 + $0x18] sm:$0xff] %v757_v12 }
 0x123   : > { %1117 = shalt.err (!%p1114_p0)
}
 0x124   : > { %s1118_s1 = scalar_lea.hbm %s1386_s6, 512  ;;  %s1122_s30 = scalar_lea.hbm %s1433_s5, 1024 }
 0x125   : > { %p1119_p1 = scmp.ne.s32.totalorder %s1386_s6, %s1118_s1  ;;  %p1123_p6 = scmp.lt.s32.totalorder %s1386_s6, %s1433_s5 }
 0x126   : > { %p1124_p8 = scmp.lt.s32.totalorder %s1122_s30, %s1118_s1 }
 0x127   : > { %p1120_p2 = pnand %p1119_p1, %p1321_p12 }
 0x128   : > { %p1125_p9 = por %p1124_p8, %p1123_p6 }
 0x129   : > { %p1121_p4 = pneg %p1120_p2 }
 0x12b   : > { %p1126_p3 = pnand %p1125_p9, %p1121_p4 }
 0x12d   : > { %1129 = shalt.err (!%p1126_p3)
}
 0x12e   : > { %944 = dma.vmem_to_hbm [thread:$0]  (%p1321_p12), %s784_s15, 512, %s1386_s6, %s767_s24  }
 0x12f PF: > { %s795_s13 = sand.u32 1, %s1168_s18   ;;  %p1452_p11 = scmp.ne.s32.totalorder %s1442_s29, 0 }
 0x130   : > { %p1453_p5 = scmp.ge.s32.totalorder %s1188_s23, 2  ;;  %s796_s14 = scalar_lea.sflag [#allocation4], %s795_s13 }
 0x132   : > { %p958_p7 = pnand %p1453_p5, %p1452_p11 }
 0x134   : > { %p959_p10 = pneg %p958_p7 }
 0x136   : > { %1163 = dma.done.wait (%p959_p10), %s796_s14, 512  }
 0x137   : > { %1165 = vsyncadd (%p959_p10), %s796_s14, 4294966784  ;;  %s22_s23 = sadd.s32 1, %s1188_s23   ;;  %s1454_s18 = smov %s1172_s19 }
 0x138   : > { %p19_p13 = scmp.ge.s32.totalorder %s22_s23, 4   ;;  %s1455_s19 = smov %s1176_s20 }
 0x139   : > { %s1456_s20 = smov %s1330_s10  ;;  %s1457_s21 = smov %s1184_s22 }
 0x13a   : > { %s1458_s22 = smov %s1460_s17  ;;  %21 = sbr.rel (!%p19_p13) target bundleno = 9 (0x9), region = 97 }
 0x13f   :  { %801 = vsyncpa [#allocation3], 1 }
 0x140   :  { %803 = vsyncpa [#allocation3 + $0x1], 1 }
 0x141   :  { %804 = vsyncpa [#allocation6], 1 }
 0x142   :  { %805 = vsyncpa [#allocation4], 1 }
 0x143   :  { %807 = vsyncpa [#allocation4 + $0x1], 1 }

</bundles_post_ra>
